<compile_context>
chip_gen: v7x
topology: tpu7x:2x2x1
jax: 0.10.0
libtpu: 0.0.40
codegen_flags: <defaults>
</compile_context>

<pallas_src>
import jax
import jax.numpy as jnp
import numpy as np
from jax.experimental import pallas as pl
from jax.experimental.pallas import tpu as pltpu

# ---- static configuration, mirrors:
# MBConvBlock(in_channel=8, out_channel=8, kernel_size=3, stride=1,
#             padding=1, drop_rate=0.0, if_se=True)
N, H, W = 2, 16, 16
C_IN = 8
C_OUT = 8
K = 3
STRIDE = 1
PAD = 1
HAS_SE = True
C_SQ = max(1, int(C_IN * 0.25))          # = 2
BN_EPS = 1e-3
ID_SKIP = (STRIDE == 1 and C_IN == C_OUT)

H_OUT = (H + 2 * PAD - K) // STRIDE + 1
W_OUT = (W + 2 * PAD - K) // STRIDE + 1
HW = H * W
NHW = N * HW
assert STRIDE == 1 and H_OUT == H and W_OUT == W
# TODO(synk): stride > 1 would need a strided lane gather after the tap sum.

# ---- packed parameter slab layout: one (C_OUT, 128) f32 block -------------
COL_WEXP = 0                   # [:, 0:8]   expand 1x1 weight (BN0 folded)
COL_WPR = 8                    # [:, 8:16]  project 1x1 weight (BN2 folded)
COL_B0 = 16                    # [:, 16]    BN0 shift
COL_B1 = 17                    # [:, 17]    BN1 shift
COL_B2 = 18                    # [:, 18]    BN2 shift
COL_WSR = 19                   # [:, 19:21] SE reduce weight  (C_OUT, C_SQ)
COL_WSE = 21                   # [:, 21:23] SE expand weight  (C_OUT, C_SQ)
COL_BSE = 23                   # [:, 23]    SE expand bias
COL_BSR = 24                   # [0:C_SQ, 24] SE reduce bias
assert COL_BSR + 1 <= 128 and C_OUT <= 8 and C_SQ <= C_OUT


# ---- host-precomputed per-image boundary masks (constant) ------------------
def _build_masks():
    hh, ww = np.meshgrid(np.arange(H), np.arange(W), indexing="ij")
    rows = []
    for kh in range(K):
        for kw in range(K):
            dh, dw = kh - PAD, kw - PAD
            m = ((hh + dh >= 0) & (hh + dh < H) &
                 (ww + dw >= 0) & (ww + dw < W)).astype(np.float32)
            rows.append(np.tile(m.reshape(-1), N))        # per-image mask, tiled
    return np.stack(rows)                                 # (K*K, N*HW)


_MASKS_NHW = _build_masks()


def _sig(v):
    # sigmoid as a single EUP transcendental (tanh), no exp + divide
    return 0.5 * jnp.tanh(0.5 * v) + 0.5


def mbconv_kernel(x_ref, p_ref, mtap_ref, o_ref):
    x = x_ref[...]                                             # (C_IN, N*HW)

    # ---- expand 1x1 conv (BN0 folded) + swish ----
    w_exp = p_ref[:, COL_WEXP:COL_WEXP + C_IN]                 # (C_OUT, C_IN)
    b0 = p_ref[:, COL_B0:COL_B0 + 1]                           # (C_OUT, 1)
    h = jnp.dot(w_exp, x, preferred_element_type=jnp.float32) + b0
    h = h * _sig(h)

    # ---- depthwise KxK conv: lane rolls + host-precomputed mask*tap rows ----
    acc = jnp.zeros((C_OUT, NHW), jnp.float32)
    for kh in range(K):
        for kw in range(K):
            off = (kh - PAD) * W + (kw - PAD)                  # flat offset
            t = kh * K + kw
            shifted = h if off == 0 else pltpu.roll(h, shift=(-off) % NHW, axis=1)
            acc = acc + shifted * mtap_ref[t * C_OUT:(t + 1) * C_OUT, :]
    h = acc + p_ref[:, COL_B1:COL_B1 + 1]
    h = h * _sig(h)

    # ---- squeeze & excite (per image, VPU/XLU only -- no MXU round trips) ----
    if HAS_SE:
        inv_hw = 1.0 / float(HW)
        sq = jnp.concatenate(
            [jnp.sum(h[:, n * HW:(n + 1) * HW], axis=1, keepdims=True) * inv_hw
             for n in range(N)], axis=1)                       # (C_OUT, N)
        w_sr = p_ref[:, COL_WSR:COL_WSR + C_SQ]                # (C_OUT, C_SQ)
        b_sr = p_ref[0:C_SQ, COL_BSR:COL_BSR + 1]              # (C_SQ, 1)
        r = jnp.concatenate(
            [jnp.sum(w_sr[:, j:j + 1] * sq, axis=0, keepdims=True)
             for j in range(C_SQ)], axis=0) + b_sr             # (C_SQ, N)
        r = r * _sig(r)                                        # swish
        w_se = p_ref[:, COL_WSE:COL_WSE + C_SQ]                # (C_OUT, C_SQ)
        e = p_ref[:, COL_BSE:COL_BSE + 1]                      # (C_OUT, 1)
        for j in range(C_SQ):
            e = e + w_se[:, j:j + 1] * r[j:j + 1, :]           # (C_OUT, N)
        gate = _sig(e)                                         # (C_OUT, N)
        gate_full = jnp.concatenate(
            [jnp.broadcast_to(gate[:, n:n + 1], (C_OUT, HW)) for n in range(N)],
            axis=1)                                            # (C_OUT, N*HW)
        h = h * gate_full

    # ---- project 1x1 conv (BN2 folded) ----
    w_pr = p_ref[:, COL_WPR:COL_WPR + C_OUT]
    b2 = p_ref[:, COL_B2:COL_B2 + 1]
    out = jnp.dot(w_pr, h, preferred_element_type=jnp.float32) + b2

    # ---- identity skip ----
    if ID_SKIP:
        # TODO(synk): drop_connect omitted (drop_rate=0.0 / eval -> identity)
        out = out + x
    o_ref[...] = out.astype(o_ref.dtype)


def mbconv_block(x_nchw, params):
    (w_exp, bn0_s, bn0_b, w_dw, bn1_s, bn1_b,
     w_sr, b_sr, w_se, b_se, w_pr, bn2_s, bn2_b) = params

    # One-time constant preprocessing (outside the kernel): fold BN into the
    # conv weights, pack everything into a single (8,128) slab, pre-multiply
    # the depthwise taps with the per-image boundary masks.
    w_exp_f = (w_exp * bn0_s).T              # (C_OUT, C_IN)
    w_dw_f = (w_dw * bn1_s).T                # (C_OUT, K*K)
    w_pr_f = (w_pr * bn2_s).T                # (C_OUT, C_OUT)

    slab = jnp.zeros((C_OUT, 128), jnp.float32)
    slab = slab.at[:, COL_WEXP:COL_WEXP + C_IN].set(w_exp_f)
    slab = slab.at[:, COL_WPR:COL_WPR + C_OUT].set(w_pr_f)
    slab = slab.at[:, COL_B0].set(bn0_b[0])
    slab = slab.at[:, COL_B1].set(bn1_b[0])
    slab = slab.at[:, COL_B2].set(bn2_b[0])
    slab = slab.at[:, COL_WSR:COL_WSR + C_SQ].set(w_sr)
    slab = slab.at[:, COL_WSE:COL_WSE + C_SQ].set(w_se.T)
    slab = slab.at[:, COL_BSE].set(b_se[0])
    slab = slab.at[0:C_SQ, COL_BSR].set(b_sr[0])

    masks = jnp.asarray(_MASKS_NHW)                           # (K*K, N*HW)
    mtap = (masks[:, None, :] * w_dw_f.T[:, :, None]).reshape(K * K * C_OUT, NHW)

    # NCHW -> (C, N*HW): channels on sublanes, batch folded into the lane axis
    # with each image occupying a contiguous 256-lane segment.
    x = jnp.transpose(x_nchw.reshape(N, C_IN, HW), (1, 0, 2)).reshape(C_IN, NHW)

    out = pl.pallas_call(
        mbconv_kernel,
        out_shape=jax.ShapeDtypeStruct((C_OUT, NHW), jnp.float32),
        grid_spec=pltpu.PrefetchScalarGridSpec(
            num_scalar_prefetch=0,
            grid=(1,),
            in_specs=[
                pl.BlockSpec((C_IN, NHW), lambda i: (0, 0)),
                pl.BlockSpec((C_OUT, 128), lambda i: (0, 0)),
                pl.BlockSpec((K * K * C_OUT, NHW), lambda i: (0, 0)),
            ],
            out_specs=pl.BlockSpec((C_OUT, NHW), lambda i: (0, 0)),
        ),
        compiler_params=pltpu.CompilerParams(
            dimension_semantics=("arbitrary",)),
    )(x, slab, mtap)
    out = jnp.transpose(out.reshape(C_OUT, N, HW), (1, 0, 2))
    return out.reshape(N, C_OUT, H_OUT, W_OUT)


# ---------------- parameter init (deterministic, "trained-like" BN) ----------
def _make_bn(key, c):
    k1, k2, k3, k4 = jax.random.split(key, 4)
    gamma = jax.random.uniform(k1, (1, c), jnp.float32, 0.5, 1.5)
    beta = 0.1 * jax.random.normal(k2, (1, c), jnp.float32)
    mean = 0.1 * jax.random.normal(k3, (1, c), jnp.float32)
    var = jax.random.uniform(k4, (1, c), jnp.float32, 0.5, 1.5)
    scale = gamma / jnp.sqrt(var + BN_EPS)
    shift = beta - mean * scale
    return scale, shift


def init_params(key):
    ks = jax.random.split(key, 9)
    w_exp = jax.random.normal(ks[0], (C_IN, C_OUT), jnp.float32) / np.sqrt(C_IN)
    bn0_s, bn0_b = _make_bn(ks[1], C_OUT)
    w_dw = jax.random.normal(ks[2], (K * K, C_OUT), jnp.float32) / np.sqrt(K * K)
    bn1_s, bn1_b = _make_bn(ks[3], C_OUT)
    w_sr = jax.random.normal(ks[4], (C_OUT, C_SQ), jnp.float32) / np.sqrt(C_OUT)
    b_sr = 0.1 * jax.random.normal(ks[5], (1, C_SQ), jnp.float32)
    w_se = jax.random.normal(ks[6], (C_SQ, C_OUT), jnp.float32) / np.sqrt(C_SQ)
    b_se = 0.1 * jax.random.normal(ks[7], (1, C_OUT), jnp.float32)
    w_pr = jax.random.normal(ks[8], (C_OUT, C_OUT), jnp.float32) / np.sqrt(C_OUT)
    bn2_s, bn2_b = _make_bn(jax.random.fold_in(key, 99), C_OUT)
    return (w_exp, bn0_s, bn0_b, w_dw, bn1_s, bn1_b,
            w_sr, b_sr, w_se, b_se, w_pr, bn2_s, bn2_b)


# ---------------- plain-JAX reference (for a correctness check) --------------
def ref_forward(x_nchw, params):
    (w_exp, bn0_s, bn0_b, w_dw, bn1_s, bn1_b,
     w_sr, b_sr, w_se, b_se, w_pr, bn2_s, bn2_b) = params
    x = jnp.transpose(x_nchw, (0, 2, 3, 1))           # NCHW -> NHWC
    h = jnp.einsum('nhwc,cd->nhwd', x, w_exp)
    h = h * bn0_s + bn0_b
    h = h * jax.nn.sigmoid(h)
    dw = w_dw.reshape(K, K, 1, C_OUT)                 # HWIO, depthwise
    h = jax.lax.conv_general_dilated(
        h, dw, window_strides=(STRIDE, STRIDE),
        padding=[(PAD, PAD), (PAD, PAD)],
        dimension_numbers=('NHWC', 'HWIO', 'NHWC'),
        feature_group_count=C_OUT)
    h = h * bn1_s + bn1_b
    h = h * jax.nn.sigmoid(h)
    if HAS_SE:
        sq = jnp.mean(h, axis=(1, 2))                 # adaptive_avg_pool2d(.,1)
        sq = sq @ w_sr + b_sr
        sq = sq * jax.nn.sigmoid(sq)
        sq = sq @ w_se + b_se
        h = h * jax.nn.sigmoid(sq)[:, None, None, :]
    out = jnp.einsum('nhwc,cd->nhwd', h, w_pr)
    out = out * bn2_s + bn2_b
    if ID_SKIP:
        out = out + x
    return jnp.transpose(out, (0, 3, 1, 2))           # back to NCHW


if __name__ == "__main__":
    key = jax.random.PRNGKey(0)
    kx, kp = jax.random.split(key)
    x = jax.random.normal(kx, (N, C_IN, H, W), jnp.float32)   # NCHW, like PyTorch
    params = init_params(kp)

    out = jax.block_until_ready(mbconv_block(x, params))
    ref = jax.block_until_ready(ref_forward(x, params))
    np.testing.assert_allclose(np.asarray(out), np.asarray(ref),
                               rtol=2e-3, atol=2e-3)
    print("KERNEL_OK")
</pallas_src>

<mosaic_0001>
module attributes {stable_mosaic.version = 11 : i64} {
  func.func @mbconv_kernel(%arg0: i32, %arg1: memref<8x512xf32, #tpu.memory_space<vmem>>, %arg2: memref<8x128xf32, #tpu.memory_space<vmem>>, %arg3: memref<72x512xf32, #tpu.memory_space<vmem>>, %arg4: memref<8x512xf32, #tpu.memory_space<vmem>>) attributes {dimension_semantics = [#tpu.dimension_semantics<arbitrary>], iteration_bounds = array<i64: 1>, scalar_prefetch = 0 : i64, scratch_operands = 0 : i64, tpu.core_type = #tpu.core_type<tc>, window_params = [{pipeline_mode = #tpu.pipeline_mode<synchronous>, transform_indices = @transform_0, window_bounds = array<i64: 8, 512>}, {pipeline_mode = #tpu.pipeline_mode<synchronous>, transform_indices = @transform_1, window_bounds = array<i64: 8, 128>}, {pipeline_mode = #tpu.pipeline_mode<synchronous>, transform_indices = @transform_2, window_bounds = array<i64: 72, 512>}, {pipeline_mode = #tpu.pipeline_mode<synchronous>, transform_indices = @transform_3, window_bounds = array<i64: 8, 512>}]} {
    %c0 = arith.constant 0 : index
    %c0_0 = arith.constant 0 : index
    %0 = vector.load %arg1[%c0, %c0_0] : memref<8x512xf32, #tpu.memory_space<vmem>>, vector<8x512xf32>
    %c0_1 = arith.constant 0 : index
    %c0_2 = arith.constant 0 : index
    %1 = vector.load %arg2[%c0_1, %c0_2] : memref<8x128xf32, #tpu.memory_space<vmem>>, vector<8x8xf32>
    %c0_3 = arith.constant 0 : index
    %c16 = arith.constant 16 : index
    %2 = vector.load %arg2[%c0_3, %c16] : memref<8x128xf32, #tpu.memory_space<vmem>>, vector<8x1xf32>
    %cst = arith.constant dense<0.000000e+00> : vector<8x512xf32>
    %3 = tpu.matmul %1, %0, %cst {dimension_numbers = #tpu.dot_dimension_numbers<[1], [0], [0], [1], [0, 0, 1, 1], [], []>} : vector<8x8xf32>, vector<8x512xf32>, vector<8x512xf32> -> vector<8x512xf32>
    %4 = vector.broadcast %2 : vector<8x1xf32> to vector<8x512xf32>
    %5 = arith.addf %3, %4 : vector<8x512xf32>
    %cst_4 = arith.constant 5.000000e-01 : f32
    %6 = vector.broadcast %cst_4 : f32 to vector<8x512xf32>
    %7 = arith.mulf %6, %5 : vector<8x512xf32>
    %8 = math.tanh %7 : vector<8x512xf32>
    %cst_5 = arith.constant 5.000000e-01 : f32
    %9 = vector.broadcast %cst_5 : f32 to vector<8x512xf32>
    %10 = arith.mulf %9, %8 : vector<8x512xf32>
    %cst_6 = arith.constant 5.000000e-01 : f32
    %11 = vector.broadcast %cst_6 : f32 to vector<8x512xf32>
    %12 = arith.addf %10, %11 : vector<8x512xf32>
    %13 = arith.mulf %5, %12 : vector<8x512xf32>
    %cst_7 = arith.constant 0.000000e+00 : f32
    %14 = vector.broadcast %cst_7 : f32 to vector<8x512xf32>
    %c17_i32 = arith.constant 17 : i32
    %15 = tpu.dynamic_rotate %13 by %c17_i32 dim 1 : vector<8x512xf32>, i32 -> vector<8x512xf32>
    %c0_8 = arith.constant 0 : index
    %c0_9 = arith.constant 0 : index
    %16 = vector.load %arg3[%c0_8, %c0_9] : memref<72x512xf32, #tpu.memory_space<vmem>>, vector<8x512xf32>
    %17 = arith.mulf %15, %16 : vector<8x512xf32>
    %18 = arith.addf %14, %17 : vector<8x512xf32>
    %c16_i32 = arith.constant 16 : i32
    %19 = tpu.dynamic_rotate %13 by %c16_i32 dim 1 : vector<8x512xf32>, i32 -> vector<8x512xf32>
    %c8 = arith.constant 8 : index
    %c0_10 = arith.constant 0 : index
    %20 = vector.load %arg3[%c8, %c0_10] : memref<72x512xf32, #tpu.memory_space<vmem>>, vector<8x512xf32>
    %21 = arith.mulf %19, %20 : vector<8x512xf32>
    %22 = arith.addf %18, %21 : vector<8x512xf32>
    %c15_i32 = arith.constant 15 : i32
    %23 = tpu.dynamic_rotate %13 by %c15_i32 dim 1 : vector<8x512xf32>, i32 -> vector<8x512xf32>
    %c16_11 = arith.constant 16 : index
    %c0_12 = arith.constant 0 : index
    %24 = vector.load %arg3[%c16_11, %c0_12] : memref<72x512xf32, #tpu.memory_space<vmem>>, vector<8x512xf32>
    %25 = arith.mulf %23, %24 : vector<8x512xf32>
    %26 = arith.addf %22, %25 : vector<8x512xf32>
    %c1_i32 = arith.constant 1 : i32
    %27 = tpu.dynamic_rotate %13 by %c1_i32 dim 1 : vector<8x512xf32>, i32 -> vector<8x512xf32>
    %c24 = arith.constant 24 : index
    %c0_13 = arith.constant 0 : index
    %28 = vector.load %arg3[%c24, %c0_13] : memref<72x512xf32, #tpu.memory_space<vmem>>, vector<8x512xf32>
    %29 = arith.mulf %27, %28 : vector<8x512xf32>
    %30 = arith.addf %26, %29 : vector<8x512xf32>
    %c32 = arith.constant 32 : index
    %c0_14 = arith.constant 0 : index
    %31 = vector.load %arg3[%c32, %c0_14] : memref<72x512xf32, #tpu.memory_space<vmem>>, vector<8x512xf32>
    %32 = arith.mulf %13, %31 : vector<8x512xf32>
    %33 = arith.addf %30, %32 : vector<8x512xf32>
    %c511_i32 = arith.constant 511 : i32
    %34 = tpu.dynamic_rotate %13 by %c511_i32 dim 1 : vector<8x512xf32>, i32 -> vector<8x512xf32>
    %c40 = arith.constant 40 : index
    %c0_15 = arith.constant 0 : index
    %35 = vector.load %arg3[%c40, %c0_15] : memref<72x512xf32, #tpu.memory_space<vmem>>, vector<8x512xf32>
    %36 = arith.mulf %34, %35 : vector<8x512xf32>
    %37 = arith.addf %33, %36 : vector<8x512xf32>
    %c497_i32 = arith.constant 497 : i32
    %38 = tpu.dynamic_rotate %13 by %c497_i32 dim 1 : vector<8x512xf32>, i32 -> vector<8x512xf32>
    %c48 = arith.constant 48 : index
    %c0_16 = arith.constant 0 : index
    %39 = vector.load %arg3[%c48, %c0_16] : memref<72x512xf32, #tpu.memory_space<vmem>>, vector<8x512xf32>
    %40 = arith.mulf %38, %39 : vector<8x512xf32>
    %41 = arith.addf %37, %40 : vector<8x512xf32>
    %c496_i32 = arith.constant 496 : i32
    %42 = tpu.dynamic_rotate %13 by %c496_i32 dim 1 : vector<8x512xf32>, i32 -> vector<8x512xf32>
    %c56 = arith.constant 56 : index
    %c0_17 = arith.constant 0 : index
    %43 = vector.load %arg3[%c56, %c0_17] : memref<72x512xf32, #tpu.memory_space<vmem>>, vector<8x512xf32>
    %44 = arith.mulf %42, %43 : vector<8x512xf32>
    %45 = arith.addf %41, %44 : vector<8x512xf32>
    %c495_i32 = arith.constant 495 : i32
    %46 = tpu.dynamic_rotate %13 by %c495_i32 dim 1 : vector<8x512xf32>, i32 -> vector<8x512xf32>
    %c64 = arith.constant 64 : index
    %c0_18 = arith.constant 0 : index
    %47 = vector.load %arg3[%c64, %c0_18] : memref<72x512xf32, #tpu.memory_space<vmem>>, vector<8x512xf32>
    %48 = arith.mulf %46, %47 : vector<8x512xf32>
    %49 = arith.addf %45, %48 : vector<8x512xf32>
    %c0_19 = arith.constant 0 : index
    %c17 = arith.constant 17 : index
    %50 = vector.load %arg2[%c0_19, %c17] : memref<8x128xf32, #tpu.memory_space<vmem>>, vector<8x1xf32>
    %51 = vector.broadcast %50 : vector<8x1xf32> to vector<8x512xf32>
    %52 = arith.addf %49, %51 : vector<8x512xf32>
    %cst_20 = arith.constant 5.000000e-01 : f32
    %53 = vector.broadcast %cst_20 : f32 to vector<8x512xf32>
    %54 = arith.mulf %53, %52 : vector<8x512xf32>
    %55 = math.tanh %54 : vector<8x512xf32>
    %cst_21 = arith.constant 5.000000e-01 : f32
    %56 = vector.broadcast %cst_21 : f32 to vector<8x512xf32>
    %57 = arith.mulf %56, %55 : vector<8x512xf32>
    %cst_22 = arith.constant 5.000000e-01 : f32
    %58 = vector.broadcast %cst_22 : f32 to vector<8x512xf32>
    %59 = arith.addf %57, %58 : vector<8x512xf32>
    %60 = arith.mulf %52, %59 : vector<8x512xf32>
    %61 = vector.extract_strided_slice %60 {offsets = [0, 0], sizes = [8, 256], strides = [1, 1]} : vector<8x512xf32> to vector<8x256xf32>
    %cst_23 = arith.constant dense<0.000000e+00> : vector<8xf32>
    %62 = vector.multi_reduction <add>, %61, %cst_23 [1] : vector<8x256xf32> to vector<8xf32>
    %63 = vector.shape_cast %62 : vector<8xf32> to vector<8x1xf32>
    %cst_24 = arith.constant 3.906250e-03 : f32
    %64 = vector.broadcast %cst_24 : f32 to vector<8x1xf32>
    %65 = arith.mulf %63, %64 : vector<8x1xf32>
    %66 = vector.extract_strided_slice %60 {offsets = [0, 256], sizes = [8, 256], strides = [1, 1]} : vector<8x512xf32> to vector<8x256xf32>
    %cst_25 = arith.constant dense<0.000000e+00> : vector<8xf32>
    %67 = vector.multi_reduction <add>, %66, %cst_25 [1] : vector<8x256xf32> to vector<8xf32>
    %68 = vector.shape_cast %67 : vector<8xf32> to vector<8x1xf32>
    %cst_26 = arith.constant 3.906250e-03 : f32
    %69 = vector.broadcast %cst_26 : f32 to vector<8x1xf32>
    %70 = arith.mulf %68, %69 : vector<8x1xf32>
    %71 = tpu.concatenate %65, %70 in 1 : vector<8x1xf32>, vector<8x1xf32> -> vector<8x2xf32>
    %c0_27 = arith.constant 0 : index
    %c19 = arith.constant 19 : index
    %72 = vector.load %arg2[%c0_27, %c19] : memref<8x128xf32, #tpu.memory_space<vmem>>, vector<8x2xf32>
    %c0_28 = arith.constant 0 : index
    %c24_29 = arith.constant 24 : index
    %73 = vector.load %arg2[%c0_28, %c24_29] : memref<8x128xf32, #tpu.memory_space<vmem>>, vector<2x1xf32>
    %74 = vector.extract_strided_slice %72 {offsets = [0, 0], sizes = [8, 1], strides = [1, 1]} : vector<8x2xf32> to vector<8x1xf32>
    %75 = vector.broadcast %74 : vector<8x1xf32> to vector<8x2xf32>
    %76 = arith.mulf %75, %71 : vector<8x2xf32>
    %cst_30 = arith.constant dense<0.000000e+00> : vector<2xf32>
    %77 = vector.multi_reduction <add>, %76, %cst_30 [0] : vector<8x2xf32> to vector<2xf32>
    %78 = vector.shape_cast %77 : vector<2xf32> to vector<1x2xf32>
    %79 = vector.extract_strided_slice %72 {offsets = [0, 1], sizes = [8, 1], strides = [1, 1]} : vector<8x2xf32> to vector<8x1xf32>
    %80 = vector.broadcast %79 : vector<8x1xf32> to vector<8x2xf32>
    %81 = arith.mulf %80, %71 : vector<8x2xf32>
    %cst_31 = arith.constant dense<0.000000e+00> : vector<2xf32>
    %82 = vector.multi_reduction <add>, %81, %cst_31 [0] : vector<8x2xf32> to vector<2xf32>
    %83 = vector.shape_cast %82 : vector<2xf32> to vector<1x2xf32>
    %84 = tpu.concatenate %78, %83 in 0 : vector<1x2xf32>, vector<1x2xf32> -> vector<2x2xf32>
    %85 = vector.broadcast %73 : vector<2x1xf32> to vector<2x2xf32>
    %86 = arith.addf %84, %85 : vector<2x2xf32>
    %cst_32 = arith.constant 5.000000e-01 : f32
    %87 = vector.broadcast %cst_32 : f32 to vector<2x2xf32>
    %88 = arith.mulf %87, %86 : vector<2x2xf32>
    %89 = math.tanh %88 : vector<2x2xf32>
    %cst_33 = arith.constant 5.000000e-01 : f32
    %90 = vector.broadcast %cst_33 : f32 to vector<2x2xf32>
    %91 = arith.mulf %90, %89 : vector<2x2xf32>
    %cst_34 = arith.constant 5.000000e-01 : f32
    %92 = vector.broadcast %cst_34 : f32 to vector<2x2xf32>
    %93 = arith.addf %91, %92 : vector<2x2xf32>
    %94 = arith.mulf %86, %93 : vector<2x2xf32>
    %c0_35 = arith.constant 0 : index
    %c21 = arith.constant 21 : index
    %95 = vector.load %arg2[%c0_35, %c21] : memref<8x128xf32, #tpu.memory_space<vmem>>, vector<8x2xf32>
    %c0_36 = arith.constant 0 : index
    %c23 = arith.constant 23 : index
    %96 = vector.load %arg2[%c0_36, %c23] : memref<8x128xf32, #tpu.memory_space<vmem>>, vector<8x1xf32>
    %97 = vector.extract_strided_slice %95 {offsets = [0, 0], sizes = [8, 1], strides = [1, 1]} : vector<8x2xf32> to vector<8x1xf32>
    %98 = vector.extract_strided_slice %94 {offsets = [0, 0], sizes = [1, 2], strides = [1, 1]} : vector<2x2xf32> to vector<1x2xf32>
    %99 = vector.broadcast %97 : vector<8x1xf32> to vector<8x2xf32>
    %100 = vector.broadcast %98 : vector<1x2xf32> to vector<8x2xf32>
    %101 = arith.mulf %99, %100 : vector<8x2xf32>
    %102 = vector.broadcast %96 : vector<8x1xf32> to vector<8x2xf32>
    %103 = arith.addf %102, %101 : vector<8x2xf32>
    %104 = vector.extract_strided_slice %95 {offsets = [0, 1], sizes = [8, 1], strides = [1, 1]} : vector<8x2xf32> to vector<8x1xf32>
    %105 = vector.extract_strided_slice %94 {offsets = [1, 0], sizes = [1, 2], strides = [1, 1]} : vector<2x2xf32> to vector<1x2xf32>
    %106 = vector.broadcast %104 : vector<8x1xf32> to vector<8x2xf32>
    %107 = vector.broadcast %105 : vector<1x2xf32> to vector<8x2xf32>
    %108 = arith.mulf %106, %107 : vector<8x2xf32>
    %109 = arith.addf %103, %108 : vector<8x2xf32>
    %cst_37 = arith.constant 5.000000e-01 : f32
    %110 = vector.broadcast %cst_37 : f32 to vector<8x2xf32>
    %111 = arith.mulf %110, %109 : vector<8x2xf32>
    %112 = math.tanh %111 : vector<8x2xf32>
    %cst_38 = arith.constant 5.000000e-01 : f32
    %113 = vector.broadcast %cst_38 : f32 to vector<8x2xf32>
    %114 = arith.mulf %113, %112 : vector<8x2xf32>
    %cst_39 = arith.constant 5.000000e-01 : f32
    %115 = vector.broadcast %cst_39 : f32 to vector<8x2xf32>
    %116 = arith.addf %114, %115 : vector<8x2xf32>
    %117 = vector.extract_strided_slice %116 {offsets = [0, 0], sizes = [8, 1], strides = [1, 1]} : vector<8x2xf32> to vector<8x1xf32>
    %118 = vector.shape_cast %117 : vector<8x1xf32> to vector<8x1xf32>
    %119 = vector.broadcast %118 : vector<8x1xf32> to vector<8x256xf32>
    %120 = vector.extract_strided_slice %116 {offsets = [0, 1], sizes = [8, 1], strides = [1, 1]} : vector<8x2xf32> to vector<8x1xf32>
    %121 = vector.shape_cast %120 : vector<8x1xf32> to vector<8x1xf32>
    %122 = vector.broadcast %121 : vector<8x1xf32> to vector<8x256xf32>
    %123 = tpu.concatenate %119, %122 in 1 : vector<8x256xf32>, vector<8x256xf32> -> vector<8x512xf32>
    %124 = arith.mulf %60, %123 : vector<8x512xf32>
    %c0_40 = arith.constant 0 : index
    %c8_41 = arith.constant 8 : index
    %125 = vector.load %arg2[%c0_40, %c8_41] : memref<8x128xf32, #tpu.memory_space<vmem>>, vector<8x8xf32>
    %c0_42 = arith.constant 0 : index
    %c18 = arith.constant 18 : index
    %126 = vector.load %arg2[%c0_42, %c18] : memref<8x128xf32, #tpu.memory_space<vmem>>, vector<8x1xf32>
    %cst_43 = arith.constant dense<0.000000e+00> : vector<8x512xf32>
    %127 = tpu.matmul %125, %124, %cst_43 {dimension_numbers = #tpu.dot_dimension_numbers<[1], [0], [0], [1], [0, 0, 1, 1], [], []>} : vector<8x8xf32>, vector<8x512xf32>, vector<8x512xf32> -> vector<8x512xf32>
    %128 = vector.broadcast %126 : vector<8x1xf32> to vector<8x512xf32>
    %129 = arith.addf %127, %128 : vector<8x512xf32>
    %130 = arith.addf %129, %0 : vector<8x512xf32>
    %c0_44 = arith.constant 0 : index
    %c0_45 = arith.constant 0 : index
    %131 = vector.load %arg4[%c0_44, %c0_45] : memref<8x512xf32, #tpu.memory_space<vmem>>, vector<8x512xf32>
    tpu.vector_store %arg4[%c0_44, %c0_45], %130 {strides = array<i32>} : memref<8x512xf32, #tpu.memory_space<vmem>>, vector<8x512xf32>,
    return
  }
  func.func @transform_0(%arg0: i32) -> (i32, i32) {
    %c0_i32 = arith.constant 0 : i32
    %c0_i32_0 = arith.constant 0 : i32
    %c0_i32_1 = arith.constant 0 : i32
    return %c0_i32, %c0_i32_0 : i32, i32
  }
  func.func @transform_1(%arg0: i32) -> (i32, i32) {
    %c0_i32 = arith.constant 0 : i32
    %c0_i32_0 = arith.constant 0 : i32
    %c0_i32_1 = arith.constant 0 : i32
    return %c0_i32, %c0_i32_0 : i32, i32
  }
  func.func @transform_2(%arg0: i32) -> (i32, i32) {
    %c0_i32 = arith.constant 0 : i32
    %c0_i32_0 = arith.constant 0 : i32
    %c0_i32_1 = arith.constant 0 : i32
    return %c0_i32, %c0_i32_0 : i32, i32
  }
  func.func @transform_3(%arg0: i32) -> (i32, i32) {
    %c0_i32 = arith.constant 0 : i32
    %c0_i32_0 = arith.constant 0 : i32
    %c0_i32_1 = arith.constant 0 : i32
    return %c0_i32, %c0_i32_0 : i32, i32
  }
}

</mosaic_0001>

<bundles_post_ra>
// kernel: tpu_custom_call.1
= control target key start
LH: loop header
LB: loop body
LE: loop exit
PB: predicated region body
PF: predicated region fallthrough
CT: control target
= control target key end

     0   :  { %8 = vsyncpa [#allocation3], 0  ;;  %s1214_s0 = inlined_call_operand.hbm [shape: f32[8,512], index: 0, kind: input, shape index: {}]   ;;  %s1215_s1 = inlined_call_operand.hbm [shape: f32[8,128], index: 1, kind: input, shape index: {}]   ;;  %s1216_s2 = inlined_call_operand.hbm [shape: f32[72,512], index: 2, kind: input, shape index: {}]   ;;  %s1217_s3 = inlined_call_operand.hbm [shape: f32[8,512], index: 3, kind: output, shape index: {}]  }
   0x1   :  { %9 = vsyncpa [#allocation6], 0 }
   0x2   :  { %10 = vsyncpa [#allocation4], 0  ;;  %s890_s12 = smov [#allocation5]   ;;  %s891_s14 = smov [#allocation2]  }
   0x3   :  { %s27_s13 = sshll.u32 %s890_s12, 4  ;;  %s17_s15 = sshll.u32 %s891_s14, 4  ;;  %s28_s13 = int_to_ptr.vmem [resolvable:$true] %s27_s13  ;;  %s18_s15 = int_to_ptr.vmem [resolvable:$true] %s17_s15 }
   0x4   :  { %s796_s18 = scalar_lea.hbm %s1215_s1, 128 }
   0x5   :  { %p797_p0 = scmp.ne.s32.totalorder %s1215_s1, %s796_s18  ;;  %p800_p1 = scmp.lt.u32.totalorder %s796_s18, %s1215_s1 }
   0x7   :  { %p802_p2 = pnand %p800_p1, %p797_p0 }
   0x9   :  { %805 = shalt.err (!%p802_p2)
}
   0xa   :  { %s806_s23 = scalar_lea.vmem %s28_s13, 128  ;;  %p811_p4 = scmp.lt.s32.totalorder %s28_s13, %s28_s13 }
   0xb   :  { %p807_p3 = scmp.ne.s32.totalorder %s28_s13, %s806_s23  ;;  %p812_p5 = scmp.lt.s32.totalorder %s806_s23, %s806_s23 }
   0xd   :  { %p813_p6 = por %p812_p5, %p811_p4 }
   0xf   :  { %p814_p7 = pnand %p813_p6, %p807_p3 }
  0x11   :  { %817 = shalt.err (!%p814_p7)
}
  0x12   :  { %30 = dma.hbm_to_vmem [thread:$0]  %s1215_s1, 128, %s28_s13, [#allocation6]  }
  0x13   :  { %s818_s28 = scalar_lea.hbm %s1214_s0, 512 }
  0x14   :  { %p819_p8 = scmp.ne.s32.totalorder %s1214_s0, %s818_s28  ;;  %p822_p9 = scmp.lt.u32.totalorder %s818_s28, %s1214_s0 }
  0x16   :  { %p824_p10 = pnand %p822_p9, %p819_p8 }
  0x18   :  { %827 = shalt.err (!%p824_p10)
}
  0x19   :  { %s828_s6 = scalar_lea.vmem %s18_s15, 512  ;;  %p833_p12 = scmp.lt.s32.totalorder %s18_s15, %s18_s15 }
  0x1a   :  { %p829_p11 = scmp.ne.s32.totalorder %s18_s15, %s828_s6  ;;  %p834_p13 = scmp.lt.s32.totalorder %s828_s6, %s828_s6 }
  0x1c   :  { %p835_p0 = por %p834_p13, %p833_p12 }
  0x1e   :  { %p836_p1 = pnand %p835_p0, %p829_p11 }
  0x20   :  { %839 = shalt.err (!%p836_p1)
}
  0x21   :  { %20 = dma.hbm_to_vmem [thread:$0]  %s1214_s0, 512, %s18_s15, [#allocation3]  }
  0x22   :  { %s892_s8 = smov [#allocation7]   ;;  %s840_s12 = scalar_lea.hbm %s1216_s2, 4608 }
  0x23   :  { %s36_s9 = sshll.u32 %s892_s8, 4  ;;  %p841_p2 = scmp.ne.s32.totalorder %s1216_s2, %s840_s12  ;;  %s37_s9 = int_to_ptr.vmem [resolvable:$true] %s36_s9 }
  0x24   :  { %p844_p3 = scmp.lt.u32.totalorder %s840_s12, %s1216_s2 }
  0x26   :  { %p846_p4 = pnand %p844_p3, %p841_p2 }
  0x28   :  { %849 = shalt.err (!%p846_p4)
}
  0x29   :  { %s850_s18 = scalar_lea.vmem %s37_s9, 4608  ;;  %p855_p6 = scmp.lt.s32.totalorder %s37_s9, %s37_s9 }
  0x2a   :  { %p851_p5 = scmp.ne.s32.totalorder %s37_s9, %s850_s18  ;;  %p856_p7 = scmp.lt.s32.totalorder %s850_s18, %s850_s18 }
  0x2c   :  { %p857_p8 = por %p856_p7, %p855_p6 }
  0x2e   :  { %p858_p9 = pnand %p857_p8, %p851_p5 }
  0x30   :  { %861 = shalt.err (!%p858_p9)
}
  0x31   :  { %s893_s0 = smov 512   ;;  %s894_s15 = smov 32  }
  0x32   :  { %42 = dma.hbm_to_vmem [thread:$0]  %s1216_s2, 4608, %s37_s9, [#allocation6], %s893_s0, %s893_s0, %s894_s15  }
  0x33   :  { %884 = dma.done.wait [#allocation3], 512  }
  0x34   :  { %885 = vsyncadd [#allocation3], 4294966784 }
  0x35   :  { %886 = dma.done.wait [#allocation6], 4736  }
  0x36   :  { %887 = vsyncadd [#allocation6], 4294962560  ;;  %v895_v0 = vmov 0.0   ;;  %v896_v1 = vmov 16   ;;  %v973_v2 = vld [vmem:[#allocation2 + $0x8] sm:$0xff]  ;;  %v975_v3 = vld [vmem:[#allocation2 + $0x18] sm:$0xff]  ;;  %v235_v60 = vlaneseq }
  0x37   :  { %129 = vmatprep.mubr.f32.mxu0 %v895_v0  ;;  %200 = vmatprep.mubr.f32.mxu1 %v895_v0  ;;  %v977_v4 = vld [vmem:[#allocation2] sm:$0xff]  ;;  %vm62_vm0 = vcmask 64512   ;;  %v981_v5 = vld [vmem:[#allocation2 + $0x10] sm:$0xff]  ;;  %v897_v7 = vmov 17   ;;  %s898_s2 = smov 17   ;;  %s899_s21 = smov 111  }
  0x38   :  { %764 = vset.pattern.permute.xlu0 %v896_v1  ;;  %65 = vmatprep.subr.mxu0 %v973_v2  ;;  %v983_v6 = vld [vmem:[#allocation5] sm:$0xff]  ;;  %s900_s22 = smov 16   ;;  %s901_s23 = smov 15   ;;  %v906_v37 = vmov 20   ;;  %v907_v38 = vmov 19   ;;  %v908_v39 = vmov 24  }
  0x39   :  { %136 = vmatprep.subr.mxu1 %v975_v3  ;;  %66 = vmatpush1.msra.mxu0 %v977_v4  ;;  %s902_s24 = smov 1   ;;  %s903_s25 = smov 127   ;;  %v1061_v62 = vand.u32 127, %v235_v60  ;;  %v268_v1 = vld [vmem:[#allocation7 + $0x28] sm:$0xff]  ;;  %vm477_vm9 = vcmask 7168   ;;  %vm485_vm10 = vcmask 15360  }
  0x3a   :  { %137 = vmatpush1.msra.mxu1 %v981_v5  ;;  %733 = vmatmul.mubr.msk.f32.vlgmr.msra.gmra.mrb[0].mxu0 %vm62_vm0, %v983_v6  ;;  %s904_s26 = smov 113   ;;  %s905_s27 = smov 112   ;;  %vm505_vm11 = vcmask 1040384  }
  0x3b   :  { %734 = vmatmul.mubr.msk.f32.vlgmr.msra.gmra.mrb[0].mxu1 %vm62_vm0, %v983_v6  ;;  %59 = vperm.xlu0 %764, %v983_v6   ;;  %vm262_vm1 = vcmp.lt.s32.totalorder %v1061_v62, 16  ;;  %vm287_vm2 = vcmp.lt.s32.totalorder %v1061_v62, 15  ;;  %vm237_vm3 = vcmp.lt.s32.totalorder %v1061_v62, 17  ;;  %vm312_vm4 = vcmp.lt.s32.totalorder %v1061_v62, 1  ;;  %s913_s28 = smov 120   ;;  %s916_s29 = smov [#allocation8]  }
  0x3c   :  { %631 = vmatprep.mubr.f32.mxu0 %v895_v0  ;;  %702 = vmatprep.mubr.f32.mxu1 %v895_v0  ;;  %vm349_vm5 = vcmp.lt.s32.totalorder %v1061_v62, 127  ;;  %vm374_vm6 = vcmp.lt.s32.totalorder %v1061_v62, 113  ;;  %vm399_vm7 = vcmp.lt.s32.totalorder %v1061_v62, 112  ;;  %vm424_vm8 = vcmp.lt.s32.totalorder %v1061_v62, 111  ;;  %s723_s30 = sshll.u32 %s916_s29, 4  ;;  %s724_s30 = int_to_ptr.vmem [resolvable:$true] %s723_s30 }
  0x3d   :  { %765 = vset.pattern.permute.xlu1 %v897_v7  ;;  %s862_s4 = scalar_lea.vmem %s724_s30, 512  ;;  %p867_p11 = scmp.lt.s32.totalorder %s724_s30, %s724_s30 }
  0x3e   :  { %p863_p10 = scmp.ne.s32.totalorder %s724_s30, %s862_s4  ;;  %p868_p12 = scmp.lt.s32.totalorder %s862_s4, %s862_s4 }
  0x3f   :  { %766 = vset.pattern.permute.xlu0 %v907_v38 }
  0x40   :  { %p869_p13 = por %p868_p12, %p867_p11 }
  0x42   :  { %p870_p0 = pnand %p869_p13, %p863_p10 }
  0xba   :  { %v60_v8 = vpop.permute.xlu0 %59 }
 0x10d   :  { %v131_v9 = vpop.f32.mrb[0].mxu0 }
 0x10e   :  { %v202_v10 = vpop.f32.mrb[0].mxu1  ;;  %v132_v11 = vadd.f32 %v131_v9, %v60_v8  ;;  %v133_v13 = vpop.f32.mrb[1].mxu0  ;;  %v244_v9 = vld [vmem:[#allocation7 + $0x10] sm:$0xff] }
 0x10f   :  { %v203_v12 = vadd.f32 %v202_v10, %v60_v8  ;;  %v204_v14 = vpop.f32.mrb[1].mxu1  ;;  %v134_v18 = vadd.f32 %v133_v13, %v60_v8 }
 0x110   :  { %v205_v15 = vadd.f32 %v204_v14, %v60_v8  ;;  %v207_v16 = vmul.f32 0.5, %v132_v11  ;;  %v243_v8 = vld [vmem:[#allocation7 + $0x8] sm:$0xff] }
 0x111   :  { %v209_v17 = vmul.f32 0.5, %v203_v12  ;;  %v208_v20 = vmul.f32 0.5, %v134_v18 }
 0x112   :  { %v210_v19 = vmul.f32 0.5, %v205_v15  ;;  %776 = vtanh.f32 %v207_v16 }
 0x113   :  { %778 = vtanh.f32 %v209_v17  ;;  %v293_v17 = vld [vmem:[#allocation7 + $0x48] sm:$0xff] }
 0x114   :  { %780 = vtanh.f32 %v210_v19 }
 0x115   :  { %782 = vtanh.f32 %v208_v20 }
 0x11c   :  { %v777_v21 = vpop.eup %776 }
 0x11d   :  { %v779_v22 = vpop.eup %778  ;;  %v215_v23 = vmul.f32 0.5, %v777_v21 }
 0x11e   :  { %v217_v24 = vmul.f32 0.5, %v779_v22  ;;  %v781_v25 = vpop.eup %780  ;;  %v267_v22 = vld [vmem:[#allocation7 + $0x20] sm:$0xff] }
 0x11f   :  { %v219_v26 = vadd.f32 0.5, %v215_v23  ;;  %v218_v29 = vmul.f32 0.5, %v781_v25  ;;  %v783_v30 = vpop.eup %782  ;;  %v242_v25 = vld [vmem:[#allocation7] sm:$0xff] }
 0x120   :  { %v221_v27 = vadd.f32 0.5, %v217_v24  ;;  %v216_v32 = vmul.f32 0.5, %v783_v30 }
 0x121   :  { %v992_v28 = vmul.f32 %v219_v26, %v132_v11  ;;  %v222_v33 = vadd.f32 0.5, %v218_v29  ;;  %v269_v11 = vld [vmem:[#allocation7 + $0x30] sm:$0xff] }
 0x122   :  { %v994_v31 = vmul.f32 %v221_v27, %v203_v12  ;;  %v220_v34 = vadd.f32 0.5, %v216_v32  ;;  %v294_v27 = vld [vmem:[#allocation7 + $0x50] sm:$0xff]  ;;  %v292_v32 = vld [vmem:[#allocation7 + $0x40] sm:$0xff] }
 0x123   :  { %227 = vrot.lane.b32.xlu0 %v992_v28, %s898_s2  ;;  %v1003_v35 = vmul.f32 %v222_v33, %v205_v15 }
 0x124   :  { %231 = vrot.lane.b32.xlu1 %v994_v31, %s898_s2  ;;  %v1008_v36 = vmul.f32 %v220_v34, %v134_v18  ;;  %v318_v34 = vld [vmem:[#allocation7 + $0x68] sm:$0xff] }
 0x127   :  { %416 = vrot.lane.b32.xlu0 %v992_v28, %s899_s21 }
 0x128   :  { %254 = vrot.lane.b32.xlu1 %v992_v28, %s900_s22 }
 0x12b   :  { %233 = vrot.lane.b32.xlu0 %v1003_v35, %s898_s2 }
 0x12c   :  { %258 = vrot.lane.b32.xlu1 %v994_v31, %s900_s22 }
 0x12f   :  { %256 = vrot.lane.b32.xlu0 %v1008_v36, %s900_s22 }
 0x130   :  { %279 = vrot.lane.b32.xlu1 %v992_v28, %s901_s23 }
 0x133   :  { %260 = vrot.lane.b32.xlu0 %v1003_v35, %s900_s22 }
 0x134   :  { %283 = vrot.lane.b32.xlu1 %v994_v31, %s901_s23 }
 0x137   :  { %281 = vrot.lane.b32.xlu0 %v1008_v36, %s901_s23 }
 0x138   :  { %304 = vrot.lane.b32.xlu1 %v992_v28, %s902_s24 }
 0x13b   :  { %285 = vrot.lane.b32.xlu0 %v1003_v35, %s901_s23 }
 0x13c   :  { %308 = vrot.lane.b32.xlu1 %v994_v31, %s902_s24 }
 0x13f   :  { %306 = vrot.lane.b32.xlu0 %v1008_v36, %s902_s24 }
 0x140   :  { %341 = vrot.lane.b32.xlu1 %v992_v28, %s903_s25 }
 0x143   :  { %310 = vrot.lane.b32.xlu0 %v1003_v35, %s902_s24 }
 0x144   :  { %345 = vrot.lane.b32.xlu1 %v994_v31, %s903_s25 }
 0x147   :  { %343 = vrot.lane.b32.xlu0 %v1008_v36, %s903_s25 }
 0x148   :  { %366 = vrot.lane.b32.xlu1 %v992_v28, %s904_s26 }
 0x14b   :  { %347 = vrot.lane.b32.xlu0 %v1003_v35, %s903_s25 }
 0x14c   :  { %370 = vrot.lane.b32.xlu1 %v994_v31, %s904_s26 }
 0x14f   :  { %368 = vrot.lane.b32.xlu0 %v1008_v36, %s904_s26 }
 0x150   :  { %391 = vrot.lane.b32.xlu1 %v992_v28, %s905_s27 }
 0x153   :  { %372 = vrot.lane.b32.xlu0 %v1003_v35, %s904_s26 }
 0x154   :  { %229 = vrot.lane.b32.xlu1 %v1008_v36, %s898_s2 }
 0x157   :  { %393 = vrot.lane.b32.xlu0 %v1008_v36, %s905_s27 }
 0x158   :  { %395 = vrot.lane.b32.xlu1 %v994_v31, %s905_s27 }
 0x15b   :  { %397 = vrot.lane.b32.xlu0 %v1003_v35, %s905_s27 }
 0x15c   :  { %442 = vperm.xlu1 %765, %v983_v6  }
 0x15f   :  { %420 = vrot.lane.b32.xlu0 %v994_v31, %s899_s21 }
 0x160   :  { %418 = vrot.lane.b32.xlu1 %v1008_v36, %s899_s21 }
 0x161   :  { %767 = vset.pattern.permute.xlu1 %v906_v37 }
 0x164   :  { %422 = vrot.lane.b32.xlu1 %v1003_v35, %s899_s21 }
 0x168   :  { %494 = vperm.xlu1 %767, %v983_v6  }
 0x16c   :  { %768 = vset.pattern.permute.xlu1 %v908_v39  ;;  %v270_v39 = vld [vmem:[#allocation7 + $0x38] sm:$0xff] }
 0x195   :  { %v228_v40 = vpop.permute.xlu0 %227 }
 0x196   :  { %v1042_v41 = vpop.permute.xlu1 %231 }
 0x199   :  { %v1044_v42 = vpop.permute.xlu0 %416 }
 0x19a   :  { %v255_v43 = vpop.permute.xlu1 %254 }
 0x19d   :  { %v234_v44 = vpop.permute.xlu0 %233 }
 0x19e   :  { %v259_v45 = vpop.permute.xlu1 %258  ;;  %v241_v26 = vsel %vm237_vm3, %v234_v44, %v228_v40 }
 0x1a1   :  { %v257_v46 = vpop.permute.xlu0 %256 }
 0x1a2   :  { %v280_v47 = vpop.permute.xlu1 %279  ;;  %v265_v7 = vsel %vm262_vm1, %v255_v43, %v257_v46  ;;  %v264_v12 = vsel %vm262_vm1, %v257_v46, %v259_v45 }
 0x1a3   :  { %v272_v16 = vmul.f32 %v268_v1, %v265_v7  ;;  %v273_v21 = vmul.f32 %v269_v11, %v264_v12  ;;  %v246_v7 = vmul.f32 %v242_v25, %v241_v26  ;;  %v295_v11 = vld [vmem:[#allocation7 + $0x58] sm:$0xff]  ;;  %v319_v12 = vld [vmem:[#allocation7 + $0x70] sm:$0xff] }
 0x1a5   :  { %v261_v48 = vpop.permute.xlu0 %260 }
 0x1a6   :  { %v284_v49 = vpop.permute.xlu1 %283  ;;  %v266_v23 = vsel %vm262_vm1, %v261_v48, %v255_v43  ;;  %v263_v43 = vsel %vm262_vm1, %v259_v45, %v261_v48 }
 0x1a7   :  { %v271_v46 = vmul.f32 %v267_v22, %v266_v23  ;;  %v331_v23 = vld [vmem:[#allocation7 + $0x90] sm:$0xff] }
 0x1a9   :  { %v282_v50 = vpop.permute.xlu0 %281 }
 0x1aa   :  { %v305_v51 = vpop.permute.xlu1 %304  ;;  %v290_v18 = vsel %vm287_vm2, %v280_v47, %v282_v50  ;;  %v289_v29 = vsel %vm287_vm2, %v282_v50, %v284_v49  ;;  %v238_v50 = vsel %vm237_vm3, %v1042_v41, %v234_v44 }
 0x1ab   :  { %v297_v30 = vmul.f32 %v293_v17, %v290_v18  ;;  %v275_v17 = vadd.f32 %v271_v46, %v246_v7  ;;  %v320_v18 = vld [vmem:[#allocation7 + $0x78] sm:$0xff]  ;;  %v356_v46 = vld [vmem:[#allocation7 + $0xb0] sm:$0xff] }
 0x1ad   :  { %v286_v52 = vpop.permute.xlu0 %285 }
 0x1ae   :  { %v1046_v53 = vpop.permute.xlu1 %308  ;;  %v291_v33 = vsel %vm287_vm2, %v286_v52, %v280_v47  ;;  %v317_v47 = vld [vmem:[#allocation7 + $0x60] sm:$0xff]  ;;  %v288_v45 = vsel %vm287_vm2, %v284_v49, %v286_v52 }
 0x1af   :  { %v296_v48 = vmul.f32 %v292_v32, %v291_v33 }
 0x1b1   :  { %v307_v54 = vpop.permute.xlu0 %306  ;;  %v300_v22 = vadd.f32 %v296_v48, %v275_v17  ;;  %v382_v17 = vld [vmem:[#allocation7 + $0xd8] sm:$0xff] }
 0x1b2   :  { %v1048_v55 = vpop.permute.xlu1 %341  ;;  %v315_v37 = vsel %vm312_vm4, %v305_v51, %v307_v54 }
 0x1b5   :  { %v1050_v56 = vpop.permute.xlu0 %310 }
 0x1b6   :  { %v1052_v57 = vpop.permute.xlu1 %345 }
 0x1b9   :  { %v1056_v59 = vpop.permute.xlu0 %343 }
 0x1ba   :  { %v1054_v58 = vpop.permute.xlu1 %366 }
 0x1bd   :  { %v1063_v63 = vpop.permute.xlu0 %347 }
 0x1be   :  { %v1058_v61 = vpop.permute.xlu1 %370 }
 0x1c1   :  { %v1074_v13 = vpop.permute.xlu0 %368 }
 0x1c2   :  { %v1066_v0 = vpop.permute.xlu1 %391 }
 0x1c5   :  { %v1096_v1 = vpop.permute.xlu0 %372 }
 0x1c6   :  { %v230_v10 = vpop.permute.xlu1 %229 }
 0x1c7   :  { %v239_v14 = vsel %vm237_vm3, %v230_v10, %v1042_v41  ;;  %v240_v15 = vsel %vm237_vm3, %v228_v40, %v230_v10  ;;  %v245_v10 = vld [vmem:[#allocation7 + $0x18] sm:$0xff]  ;;  %v274_v41 = vmul.f32 %v270_v39, %v263_v43 }
 0x1c8   :  { %v247_v19 = vmul.f32 %v243_v8, %v240_v15  ;;  %v248_v20 = vmul.f32 %v244_v9, %v239_v14  ;;  %v298_v8 = vmul.f32 %v294_v27, %v289_v29  ;;  %v316_v9 = vsel %vm312_vm4, %v1050_v56, %v305_v51  ;;  %v355_v29 = vld [vmem:[#allocation7 + $0xa8] sm:$0xff]  ;;  %v332_v43 = vld [vmem:[#allocation7 + $0x98] sm:$0xff] }
 0x1c9   :  { %v314_v14 = vsel %vm312_vm4, %v307_v54, %v1046_v53  ;;  %v322_v15 = vmul.f32 %v318_v34, %v315_v37  ;;  %v313_v51 = vsel %vm312_vm4, %v1046_v53, %v1050_v56  ;;  %v321_v49 = vmul.f32 %v317_v47, %v316_v9  ;;  %v329_v54 = vld [vmem:[#allocation7 + $0x80] sm:$0xff]  ;;  %v394_v25 = vpop.permute.xlu0 %393 }
 0x1ca   :  { %v276_v24 = vadd.f32 %v272_v16, %v247_v19  ;;  %v277_v38 = vadd.f32 %v273_v21, %v248_v20  ;;  %v330_v16 = vld [vmem:[#allocation7 + $0x88] sm:$0xff]  ;;  %v249_v19 = vmul.f32 %v245_v10, %v238_v50  ;;  %v299_v20 = vmul.f32 %v295_v11, %v288_v45  ;;  %v354_v34 = vld [vmem:[#allocation7 + $0xa0] sm:$0xff]  ;;  %v396_v7 = vpop.permute.xlu1 %395 }
 0x1cb   :  { %v323_v21 = vmul.f32 %v319_v12, %v314_v14  ;;  %v324_v27 = vmul.f32 %v320_v18, %v313_v51  ;;  %v325_v56 = vadd.f32 %v321_v49, %v300_v22  ;;  %v333_v37 = vmul.f32 %v329_v54, %v992_v28  ;;  %v404_v14 = vld [vmem:[#allocation7 + $0xe0] sm:$0xff]  ;;  %v407_v54 = vld [vmem:[#allocation7 + $0xf8] sm:$0xff] }
 0x1cc   :  { %v301_v40 = vadd.f32 %v297_v30, %v276_v24  ;;  %v302_v44 = vadd.f32 %v298_v8, %v277_v38  ;;  %v334_v24 = vmul.f32 %v330_v16, %v1008_v36  ;;  %v278_v26 = vadd.f32 %v274_v41, %v249_v19  ;;  %v379_v8 = vld [vmem:[#allocation7 + $0xc0] sm:$0xff]  ;;  %v381_v16 = vld [vmem:[#allocation7 + $0xd0] sm:$0xff] }
 0x1cd   :  { %v351_v30 = vsel %vm349_vm5, %v1056_v59, %v1052_v57  ;;  %v352_v36 = vsel %vm349_vm5, %v1048_v55, %v1056_v59  ;;  %v335_v38 = vmul.f32 %v331_v23, %v994_v31  ;;  %v350_v50 = vsel %vm349_vm5, %v1052_v57, %v1063_v63  ;;  %v380_v31 = vld [vmem:[#allocation7 + $0xc8] sm:$0xff] }
 0x1ce   :  { %v326_v52 = vadd.f32 %v322_v15, %v301_v40  ;;  %v327_v53 = vadd.f32 %v323_v21, %v302_v44  ;;  %v303_v33 = vadd.f32 %v299_v20, %v278_v26  ;;  %v359_v39 = vmul.f32 %v355_v29, %v351_v30  ;;  %v357_v40 = vld [vmem:[#allocation7 + $0xb8] sm:$0xff]  ;;  %v406_v30 = vld [vmem:[#allocation7 + $0xf0] sm:$0xff] }
 0x1cf   :  { %v353_v28 = vsel %vm349_vm5, %v1063_v63, %v1048_v55  ;;  %v376_v47 = vsel %vm374_vm6, %v1074_v13, %v1058_v61  ;;  %v377_v57 = vsel %vm374_vm6, %v1054_v58, %v1074_v13  ;;  %v337_v10 = vadd.f32 %v333_v37, %v325_v56  ;;  %v398_v63 = vpop.permute.xlu0 %397 }
 0x1d0   :  { %v338_v32 = vadd.f32 %v334_v24, %v326_v52  ;;  %v328_v59 = vadd.f32 %v324_v27, %v303_v33  ;;  %v339_v9 = vadd.f32 %v335_v38, %v327_v53  ;;  %v358_v11 = vmul.f32 %v354_v34, %v352_v36  ;;  %v405_v52 = vld [vmem:[#allocation7 + $0xe8] sm:$0xff] }
 0x1d1   :  { %v336_v45 = vmul.f32 %v332_v43, %v1003_v35  ;;  %v360_v48 = vmul.f32 %v356_v46, %v350_v50  ;;  %v361_v12 = vmul.f32 %v357_v40, %v353_v28  ;;  %v402_v15 = vsel %vm399_vm7, %v1066_v0, %v394_v25  ;;  %v431_v40 = vld [vmem:[#allocation7 + $0x110] sm:$0xff]  ;;  %v432_v50 = vld [vmem:[#allocation7 + $0x118] sm:$0xff] }
 0x1d2   :  { %v363_v55 = vadd.f32 %v359_v39, %v338_v32  ;;  %v383_v41 = vmul.f32 %v379_v8, %v377_v57  ;;  %v384_v44 = vmul.f32 %v380_v31, %v376_v47  ;;  %v375_v13 = vsel %vm374_vm6, %v1058_v61, %v1096_v1 }
 0x1d3   :  { %v378_v35 = vsel %vm374_vm6, %v1096_v1, %v1054_v58  ;;  %v340_v51 = vadd.f32 %v336_v45, %v328_v59  ;;  %v364_v49 = vadd.f32 %v360_v48, %v339_v9  ;;  %v401_v19 = vsel %vm399_vm7, %v394_v25, %v396_v7  ;;  %v429_v58 = vld [vmem:[#allocation7 + $0x100] sm:$0xff]  ;;  %v430_v1 = vld [vmem:[#allocation7 + $0x108] sm:$0xff]  ;;  %v421_v53 = vpop.permute.xlu0 %420 }
 0x1d4   :  { %v362_v20 = vadd.f32 %v358_v11, %v337_v10  ;;  %v388_v21 = vadd.f32 %v384_v44, %v363_v55  ;;  %v408_v22 = vmul.f32 %v404_v14, %v402_v15  ;;  %v403_v61 = vsel %vm399_vm7, %v398_v63, %v1066_v0 }
 0x1d5   :  { %v385_v23 = vmul.f32 %v381_v16, %v375_v13  ;;  %v386_v24 = vmul.f32 %v382_v17, %v378_v35  ;;  %v365_v26 = vadd.f32 %v361_v12, %v340_v51  ;;  %v409_v29 = vmul.f32 %v405_v52, %v401_v19 }
 0x1d6   :  { %v387_v27 = vadd.f32 %v383_v41, %v362_v20  ;;  %v400_v25 = vsel %vm399_vm7, %v396_v7, %v398_v63  ;;  %v411_v33 = vmul.f32 %v407_v54, %v403_v61 }
 0x1d7   :  { %v389_v32 = vadd.f32 %v385_v23, %v364_v49  ;;  %v413_v36 = vadd.f32 %v409_v29, %v388_v21  ;;  %v390_v43 = vadd.f32 %v386_v24, %v365_v26  ;;  %v410_v46 = vmul.f32 %v406_v30, %v400_v25 }
 0x1d8   :  { %v412_v37 = vadd.f32 %v408_v22, %v387_v27  ;;  %v910_v26 = vmov 23   ;;  %v911_v27 = vmov 22   ;;  %v912_v29 = vmov 0  }
 0x1d9   :  { %v414_v8 = vadd.f32 %v410_v46, %v389_v32  ;;  %v415_v31 = vadd.f32 %v411_v33, %v390_v43 }
 0x1db   :  { %v443_v18 = vpop.permute.xlu1 %442 }
 0x1df   :  { %v419_v56 = vpop.permute.xlu1 %418 }
 0x1e0   :  { %v426_v34 = vsel %vm424_vm8, %v419_v56, %v421_v53  ;;  %v427_v0 = vsel %vm424_vm8, %v1044_v42, %v419_v56 }
 0x1e1   :  { %v433_v38 = vmul.f32 %v429_v58, %v427_v0  ;;  %v434_v39 = vmul.f32 %v430_v1, %v426_v34  ;;  %v479_v58 = vld [vmem:[#allocation5] sm:$0x3]  ;;  %v909_v1 = vmov 21  }
 0x1e3   :  { %v437_v28 = vadd.f32 %v433_v38, %v412_v37  ;;  %v438_v7 = vadd.f32 %v434_v39, %v413_v36  ;;  %v423_v59 = vpop.permute.xlu1 %422 }
 0x1e4   :  { %v425_v47 = vsel %vm424_vm8, %v421_v53, %v423_v59  ;;  %v428_v57 = vsel %vm424_vm8, %v423_v59, %v1044_v42 }
 0x1e5   :  { %v435_v9 = vmul.f32 %v431_v40, %v425_v47  ;;  %v436_v10 = vmul.f32 %v432_v50, %v428_v57  ;;  %v445_v11 = vadd.f32 %v443_v18, %v437_v28  ;;  %v446_v55 = vadd.f32 %v443_v18, %v438_v7 }
 0x1e7   :  { %v439_v63 = vadd.f32 %v435_v9, %v414_v8  ;;  %v440_v45 = vadd.f32 %v436_v10, %v415_v31  ;;  %v449_v48 = vmul.f32 0.5, %v445_v11  ;;  %v450_v12 = vmul.f32 0.5, %v446_v55  ;;  %v495_v30 = vpop.permute.xlu1 %494 }
 0x1e9   :  { %784 = vtanh.f32 %v449_v48  ;;  %v447_v14 = vadd.f32 %v443_v18, %v439_v63  ;;  %v448_v15 = vadd.f32 %v443_v18, %v440_v45  ;;  %v523_v45 = vshrl.u32 %v235_v60, 7 }
 0x1ea   :  { %786 = vtanh.f32 %v450_v12  ;;  %v914_v60 = vmov 1  }
 0x1eb   :  { %v451_v41 = vmul.f32 0.5, %v447_v14  ;;  %v452_v44 = vmul.f32 0.5, %v448_v15 }
 0x1ed   :  { %788 = vtanh.f32 %v451_v41  ;;  %v524_v41 = vsub.s32 0, %v523_v45 }
 0x1ee   :  { %790 = vtanh.f32 %v452_v44  ;;  %v538_v44 = vsub.s32 1, %v523_v45 }
 0x1f3   :  { %v785_v16 = vpop.eup %784 }
 0x1f4   :  { %v787_v17 = vpop.eup %786  ;;  %v457_v62 = vmul.f32 0.5, %v785_v16 }
 0x1f5   :  { %v458_v42 = vmul.f32 0.5, %v787_v17 }
 0x1f6   :  { %v461_v13 = vadd.f32 0.5, %v457_v62 }
 0x1f7   :  { %v789_v35 = vpop.eup %788  ;;  %v462_v51 = vadd.f32 0.5, %v458_v42 }
 0x1f8   :  { %v791_v49 = vpop.eup %790  ;;  %v1173_v52 = vmul.f32 %v461_v13, %v445_v11  ;;  %v459_v19 = vmul.f32 0.5, %v789_v35 }
 0x1f9   :  { %v1175_v20 = vmul.f32 %v462_v51, %v446_v55  ;;  %v460_v21 = vmul.f32 0.5, %v791_v49 }
 0x1fa   :  { %v463_v18 = vadd.f32 0.5, %v459_v19 }
 0x1fb   :  { %v469_v22 = vadd.f32 %v1175_v20, %v1173_v52  ;;  %v464_v54 = vadd.f32 0.5, %v460_v21 }
 0x1fc   :  { %v1179_v61 = vmul.f32 %v463_v18, %v447_v14 }
 0x1fd   :  { %470 = vadd.xlane.f32.xlu0 %v469_v22  ;;  %v1181_v23 = vmul.f32 %v464_v54, %v448_v15  ;;  %v915_v54 = vmov 18  }
 0x1ff   :  { %v473_v24 = vadd.f32 %v1181_v23, %v1179_v61 }
 0x201   :  { %474 = vadd.xlane.f32.xlu1 %v473_v24 }
 0x212   :  { %509 = vperm.xlu1 %768, %v479_v58  }
 0x213   :  { %481 = vperm.xlu0 %766, %v983_v6  }
 0x216   :  { %769 = vset.pattern.permute.xlu1 %v909_v1 }
 0x217   :  { %519 = vperm.xlu1 %769, %v983_v6   ;;  %563 = vrot.lane.b32.xlu0 %v983_v6, %s913_s28 }
 0x218   :  { %775 = vset.pattern.permute.xlu0 %v915_v54 }
 0x21b   :  { %770 = vset.pattern.permute.xlu1 %v910_v26 }
 0x21c   :  { %528 = vperm.xlu1 %770, %v983_v6  }
 0x220   :  { %771 = vset.pattern.permute.xlu1 %v911_v27 }
 0x221   :  { %533 = vperm.xlu1 %771, %v983_v6  }
 0x225   :  { %772 = vset.pattern.permute.xlu1 %v912_v29 }
 0x28a   :  { %v471_v25 = vpop.xlane.xlu0 %470 }
 0x28b   :  { %v472_v56 = vmul.f32 0.00390625, %v471_v25 }
 0x28e   :  { %v475_v53 = vpop.xlane.xlu1 %474 }
 0x28f   :  { %v476_v32 = vmul.f32 0.00390625, %v475_v53 }
 0x291   :  { %v478_v33 = vsel %vm477_vm9, %v472_v56, %v476_v32 }
 0x292   :  { %v497_v34 = vmul.f32 %v495_v30, %v478_v33  ;;  %v482_v0 = vpop.permute.xlu0 %481  ;;  %v510_v57 = vpop.permute.xlu1 %509 }
 0x293   :  { %v484_v37 = vmul.f32 %v482_v0, %v478_v33 }
 0x294   :  { %v498_v36 = vsel %vm485_vm10, %v497_v34, 0.0 }
 0x295   :  { %v499_v38 = vrot.slane %v498_v36, 4  ;;  %v486_v39 = vsel %vm485_vm10, %v484_v37, 0.0 }
 0x296   :  { %v487_v43 = vrot.slane %v486_v39, 4  ;;  %v520_v63 = vpop.permute.xlu1 %519  ;;  %v564_v26 = vpop.permute.xlu0 %563 }
 0x297   :  { %v500_v46 = vadd.f32 %v499_v38, %v498_v36 }
 0x298   :  { %v488_v40 = vadd.f32 %v487_v43, %v486_v39 }
 0x299   :  { %v501_v50 = vrot.slane %v500_v46, 2 }
 0x29a   :  { %v489_v28 = vrot.slane %v488_v40, 2 }
 0x29b   :  { %v502_v7 = vadd.f32 %v501_v50, %v500_v46  ;;  %v529_v14 = vpop.permute.xlu1 %528 }
 0x29c   :  { %v490_v59 = vadd.f32 %v489_v28, %v488_v40 }
 0x29d   :  { %v503_v8 = vrot.slane %v502_v7, 1 }
 0x29e   :  { %v491_v31 = vrot.slane %v490_v59, 1 }
 0x29f   :  { %v504_v47 = vadd.f32 %v503_v8, %v502_v7 }
 0x2a0   :  { %v492_v9 = vadd.f32 %v491_v31, %v490_v59  ;;  %v534_v42 = vpop.permute.xlu1 %533 }
 0x2a2   :  { %v506_v10 = vsel %vm505_vm11, %v492_v9, %v504_v47 }
 0x2a3   :  { %v512_v11 = vadd.f32 %v510_v57, %v506_v10 }
 0x2a5   :  { %v513_v55 = vmul.f32 0.5, %v512_v11 }
 0x2a7   :  { %792 = vtanh.f32 %v513_v55 }
 0x2b1   :  { %v793_v48 = vpop.eup %792 }
 0x2b2   :  { %v515_v12 = vmul.f32 0.5, %v793_v48 }
 0x2b4   :  { %v516_v15 = vadd.f32 0.5, %v515_v12 }
 0x2b6   :  { %v517_v16 = vmul.f32 %v516_v15, %v512_v11 }
 0x2b8   :  { %v525_v17 = vrot.slane %v517_v16, %v524_v41  ;;  %v539_v62 = vrot.slane %v517_v16, %v538_v44 }
 0x2ba   :  { %v526_v13 = vmul.f32 %v525_v17, %v520_v63  ;;  %v540_v51 = vmul.f32 %v539_v62, %v534_v42 }
 0x2bc   :  { %v531_v35 = vadd.f32 %v529_v14, %v526_v13 }
 0x2be   :  { %v541_v49 = vadd.f32 %v540_v51, %v531_v35 }
 0x2c0   :  { %v542_v19 = vmul.f32 0.5, %v541_v49 }
 0x2c2   :  { %794 = vtanh.f32 %v542_v19 }
 0x2cc   :  { %v795_v21 = vpop.eup %794 }
 0x2cd   :  { %v544_v18 = vmul.f32 0.5, %v795_v21 }
 0x2cf   :  { %v545_v22 = vadd.f32 0.5, %v544_v18 }
 0x2d1   :  { %548 = vperm.xlu1 %772, %v545_v22  }
 0x2d5   :  { %773 = vset.pattern.permute.xlu1 %v914_v60 }
 0x2d6   :  { %552 = vperm.xlu1 %773, %v545_v22  }
 0x2da   :  { %774 = vset.pattern.permute.xlu1 %v915_v54 }
 0x2db   :  { %560 = vperm.xlu1 %774, %v983_v6  }
 0x350   :  { %v549_v24 = vpop.permute.xlu1 %548 }
 0x351   :  { %v555_v58 = vmul.f32 %v549_v24, %v1173_v52  ;;  %v556_v1 = vmul.f32 %v549_v24, %v1175_v20 }
 0x353   :  { %567 = vmatprep.subr.mxu0 %v556_v1 }
 0x354   :  { %568 = vmatpush1.msra.mxu0 %v555_v58 }
 0x355   :  { %v553_v27 = vpop.permute.xlu1 %552  ;;  %735 = vmatmul.mubr.msk.f32.vlgmr.msra.gmra.mrb[2].mxu0 %vm62_vm0, %v564_v26 }
 0x356   :  { %v557_v29 = vmul.f32 %v553_v27, %v1179_v61  ;;  %v558_v30 = vmul.f32 %v553_v27, %v1181_v23 }
 0x358   :  { %638 = vmatprep.subr.mxu1 %v558_v30 }
 0x359   :  { %639 = vmatpush1.msra.mxu1 %v557_v29 }
 0x35a   :  { %736 = vmatmul.mubr.msk.f32.vlgmr.msra.gmra.mrb[2].mxu1 %vm62_vm0, %v564_v26  ;;  %v561_v6 = vpop.permute.xlu1 %560 }
 0x428   :  { %v633_v25 = vpop.f32.mrb[2].mxu0 }
 0x429   :  { %v634_v53 = vadd.f32 %v633_v25, %v561_v6  ;;  %v635_v52 = vpop.f32.mrb[3].mxu0 }
 0x42a   :  { %v636_v56 = vadd.f32 %v635_v52, %v561_v6 }
 0x42b   :  { %v709_v20 = vadd.f32 %v634_v53, %v977_v4 }
 0x42c   :  { %v710_v32 = vadd.f32 %v636_v56, %v973_v2 }
 0x42d   :  { %v704_v33 = vpop.f32.mrb[2].mxu1  ;;  %713 = vst [vmem:[#allocation8] sm:$0xff] %v709_v20 }
 0x42e   :  { %v705_v34 = vadd.f32 %v704_v33, %v561_v6  ;;  %714 = vst [vmem:[#allocation8 + $0x8] sm:$0xff] %v710_v32  ;;  %v706_v61 = vpop.f32.mrb[3].mxu1 }
 0x42f   :  { %v707_v23 = vadd.f32 %v706_v61, %v561_v6 }
 0x430   :  { %v711_v0 = vadd.f32 %v705_v34, %v981_v5 }
 0x431   :  { %v712_v37 = vadd.f32 %v707_v23, %v975_v3 }
 0x432   :  { %715 = vst [vmem:[#allocation8 + $0x10] sm:$0xff] %v711_v0 }
 0x433   :  { %716 = vst [vmem:[#allocation8 + $0x18] sm:$0xff] %v712_v37 }
 0x434   :  { %873 = shalt.err (!%p870_p0)
}
 0x435   :  { %s874_s1 = scalar_lea.hbm %s1217_s3, 512 }
 0x436   :  { %p875_p1 = scmp.ne.s32.totalorder %s1217_s3, %s874_s1  ;;  %p878_p2 = scmp.lt.u32.totalorder %s874_s1, %s1217_s3 }
 0x438   :  { %p880_p3 = pnand %p878_p2, %p875_p1 }
 0x43a   :  { %883 = shalt.err (!%p880_p3)
}
 0x43b   :  { %726 = dma.vmem_to_hbm [thread:$0]  %s724_s30, 512, %s1217_s3, [#allocation4]  }
 0x43c   :  { %888 = dma.done.wait [#allocation4], 512  }
 0x43d   :  { %889 = vsyncadd [#allocation4], 4294966784 }
 0x43e   :  { %730 = vsyncpa [#allocation3], 1 }
 0x43f   :  { %731 = vsyncpa [#allocation6], 1 }
 0x440   :  { %732 = vsyncpa [#allocation4], 1 }

</bundles_post_ra>
